<compile_context>
chip_gen: v7x
topology: tpu7x:2x2x1
jax: 0.10.0
libtpu: 0.0.40
codegen_flags: <defaults>
</compile_context>

<pallas_src>
import functools

import jax
import jax.numpy as jnp
from jax import lax
from jax.experimental import pallas as pl
from jax.experimental.pallas import tpu as pltpu


def _noisy_ce_kernel(p_ref, logits_ref, targets_ref, out_ref, *,
                     n_rows: int, tile_n: int):
    """One batch tile: per-row CE loss * noisy weight -> one partial sum.

    p_ref      : (1, 1) f32 SMEM  (noise probability p)
    logits_ref : (TILE_N, C) VMEM, native dtype (f32/bf16)
    targets_ref: (TILE_N, 1) i32 VMEM
    out_ref    : (8, 128) f32 VMEM (partial sum at [0, 0], rest zero)
    """
    i = pl.program_id(0)
    p = p_ref[0, 0]

    x = logits_ref[...]                                       # (TILE_N, C) native
    tgt = targets_ref[...]                                     # (TILE_N, 1) int32
    tn, c = x.shape

    # Row max in native dtype (bf16 VPU on v6e/v7x); one f32 cast of the
    # shifted tile, reused for both exp() and the target-logit pick.
    m = jnp.max(x, axis=-1, keepdims=True)                     # (TILE_N, 1)
    shifted = (x - m).astype(jnp.float32)                      # (TILE_N, C) f32

    # Target-logit pick via iota/compare (no gather, no float one_hot temp).
    col_ids = lax.broadcasted_iota(jnp.int32, (tn, c), 1)
    tgt_mask = col_ids == tgt

    # loss = logsumexp(x) - x[target] = log(sum exp(shifted)) - shifted[target]
    sum_exp = jnp.sum(jnp.exp(shifted), axis=-1, keepdims=True)
    tgt_shift = jnp.sum(jnp.where(tgt_mask, shifted, 0.0), axis=-1, keepdims=True)
    losses = jnp.log(sum_exp) - tgt_shift                      # (TILE_N, 1)

    # one_hot(t, C).sum(dim=1) == 1 for any in-range target, so the weight is
    # just 1 - p (and 1 for out-of-range); computed on the tiny column only.
    in_range = ((tgt >= 0) & (tgt < c)).astype(jnp.float32)
    weights = (1.0 - p) + p * (1.0 - in_range)

    # Ragged boundary block (no wrapper-side pad): SELECT out invalid rows so
    # garbage NaN/Inf from unspecified VMEM never reaches the partial sum.
    row_ids = i * tile_n + lax.broadcasted_iota(jnp.int32, (tn, 1), 0)
    valid = row_ids < n_rows
    partial = jnp.sum(jnp.where(valid, losses * weights, 0.0))  # scalar f32

    # Lane-dense (8, 128) output block; partial sum lives at [0, 0].
    row = lax.broadcasted_iota(jnp.int32, (8, 128), 0)
    lane = lax.broadcasted_iota(jnp.int32, (8, 128), 1)
    out_ref[...] = jnp.where((row == 0) & (lane == 0), partial, 0.0)


def noisy_cross_entropy_loss(logits: jax.Array, targets: jax.Array,
                             p_noisy, *, tile_n: int | None = None) -> jax.Array:
    """logits: (N, C) float (f32/bf16), targets: (N,) int -> scalar float32."""
    n, c = logits.shape
    itemsize = jnp.dtype(logits.dtype).itemsize

    # Scoped VMEM limit from the chip's capacity: v5e/v6e (128 MiB) -> 64 MiB,
    # v7x (64 MiB per TC) -> 32 MiB.
    try:
        vmem_cap = int(pltpu.get_tpu_info().vmem_capacity_bytes)
    except Exception:
        vmem_cap = 64 * 1024 * 1024
    scoped_limit = int(min(vmem_cap // 2, 96 * 1024 * 1024))

    if tile_n is None:
        # Per-step working set ~= 2x native logits block (double-buffered DMA)
        # + ~4x f32/int32 full-size temporaries (cast, exp, iota, mask/select)
        # + small targets/partials slack.  Keep it under ~75% of the limit.
        bytes_per_row = c * (2 * itemsize + 4 * 4) + 64
        budget_rows = (3 * scoped_limit // 4) // bytes_per_row
        tile_n = max(16, min(4096, (budget_rows // 16) * 16))
    tile_n = int(min(tile_n, ((n + 7) // 8) * 8))   # never exceed batch (mult of 8)

    grid = pl.cdiv(n, tile_n)
    targets_2d = targets.astype(jnp.int32).reshape(n, 1)
    p_arr = jnp.full((1, 1), p_noisy, dtype=jnp.float32)   # SMEM scalar, no recompile per p

    kernel = functools.partial(_noisy_ce_kernel, n_rows=n, tile_n=tile_n)

    # TODO(synk): for vocabularies where a single (TILE_N, C) block no longer
    # fits VMEM, add a second grid axis over C with an online logsumexp.
    partials = pl.pallas_call(
        kernel,
        out_shape=jax.ShapeDtypeStruct((grid * 8, 128), jnp.float32),
        grid=(grid,),
        in_specs=[
            pl.BlockSpec(memory_space=pltpu.MemorySpace.SMEM),   # p (1,1) f32
            pl.BlockSpec((tile_n, c), lambda i: (i, 0)),          # logits, native dtype
            pl.BlockSpec((tile_n, 1), lambda i: (i, 0)),          # targets
        ],
        out_specs=pl.BlockSpec((8, 128), lambda i: (i, 0)),
        compiler_params=pltpu.CompilerParams(
            dimension_semantics=("parallel",),   # shards grid across TCs on v7x
            vmem_limit_bytes=scoped_limit,
        ),
    )(p_arr, logits, targets_2d)

    # Tiny finalize outside the kernel: sum per-tile partials, take the mean.
    return jnp.sum(partials) / jnp.float32(n)


def _reference(logits, targets, p_noisy):
    # Pure-JAX reference mirroring the PyTorch forward.
    logits = logits.astype(jnp.float32)
    n, c = logits.shape
    log_probs = jax.nn.log_softmax(logits, axis=-1)
    losses = -jnp.take_along_axis(log_probs, targets[:, None], axis=1)[:, 0]
    one_hot = jax.nn.one_hot(targets, c, dtype=jnp.float32)
    weights = 1.0 - p_noisy + p_noisy * (1.0 - one_hot.sum(axis=1))
    return jnp.mean(losses * weights)


if __name__ == "__main__":
    P_NOISY = 0.1
    N, C = 8, 128  # small shapes; C on the 128-lane axis

    key = jax.random.PRNGKey(0)
    k_logits, k_targets = jax.random.split(key)
    logits = jax.random.normal(k_logits, (N, C), dtype=jnp.float32)
    targets = jax.random.randint(k_targets, (N,), 0, C, dtype=jnp.int32)

    out = noisy_cross_entropy_loss(logits, targets, P_NOISY)
    out = jax.block_until_ready(out)

    ref = _reference(logits, targets, P_NOISY)
    assert jnp.allclose(out, ref, rtol=1e-5, atol=1e-5), (out, ref)

    # Multi-tile, non-divisible batch (forced small tile) to cover the
    # in-kernel ragged-row masking without any wrapper-side padding.
    N2, C2 = 300, 128
    logits2 = jax.random.normal(k_logits, (N2, C2), dtype=jnp.float32)
    targets2 = jax.random.randint(k_targets, (N2,), 0, C2, dtype=jnp.int32)
    out2 = jax.block_until_ready(
        noisy_cross_entropy_loss(logits2, targets2, P_NOISY, tile_n=128))
    ref2 = _reference(logits2, targets2, P_NOISY)
    assert jnp.allclose(out2, ref2, rtol=1e-5, atol=1e-5), (out2, ref2)

    # Auto-sized tile path on the same ragged batch.
    out3 = jax.block_until_ready(
        noisy_cross_entropy_loss(logits2, targets2, P_NOISY))
    assert jnp.allclose(out3, ref2, rtol=1e-5, atol=1e-5), (out3, ref2)

    print("KERNEL_OK")
</pallas_src>

<mosaic_0001>
module attributes {stable_mosaic.version = 11 : i64} {
  func.func @_noisy_ce_kernel(%arg0: i32, %arg1: memref<1x1xf32, #tpu.memory_space<smem>>, %arg2: memref<8x128xf32, #tpu.memory_space<vmem>>, %arg3: memref<8x1xi32, #tpu.memory_space<vmem>>, %arg4: memref<8x128xf32, #tpu.memory_space<vmem>>) attributes {dimension_semantics = [#tpu.dimension_semantics<parallel>], iteration_bounds = array<i64: 1>, scalar_prefetch = 0 : i64, scratch_operands = 0 : i64, tpu.core_type = #tpu.core_type<tc>, window_params = [{transform_indices = @transform_0, window_bounds = array<i64: 1, 1>}, {transform_indices = @transform_1, window_bounds = array<i64: 8, 128>}, {transform_indices = @transform_2, window_bounds = array<i64: 8, 1>}, {transform_indices = @transform_3, window_bounds = array<i64: 8, 128>}]} {
    %c0 = arith.constant 0 : index
    %c0_0 = arith.constant 0 : index
    %0 = memref.load %arg1[%c0, %c0_0] : memref<1x1xf32, #tpu.memory_space<smem>>
    %c0_1 = arith.constant 0 : index
    %c0_2 = arith.constant 0 : index
    %1 = vector.load %arg2[%c0_1, %c0_2] : memref<8x128xf32, #tpu.memory_space<vmem>>, vector<8x128xf32>
    %c0_3 = arith.constant 0 : index
    %c0_4 = arith.constant 0 : index
    %2 = vector.load %arg3[%c0_3, %c0_4] : memref<8x1xi32, #tpu.memory_space<vmem>>, vector<8x1xi32>
    %cst = arith.constant dense<0xFF800000> : vector<8xf32>
    %3 = vector.multi_reduction <maximumf>, %1, %cst [1] : vector<8x128xf32> to vector<8xf32>
    %4 = vector.shape_cast %3 : vector<8xf32> to vector<8x1xf32>
    %5 = vector.broadcast %4 : vector<8x1xf32> to vector<8x128xf32>
    %6 = arith.subf %1, %5 : vector<8x128xf32>
    %7 = tpu.iota {dimensions = array<i32: 1>} : vector<8x128xi32>
    %8 = vector.broadcast %2 : vector<8x1xi32> to vector<8x128xi32>
    %9 = arith.cmpi eq, %7, %8 : vector<8x128xi32>
    %10 = math.exp %6 : vector<8x128xf32>
    %cst_5 = arith.constant dense<0.000000e+00> : vector<8xf32>
    %11 = vector.multi_reduction <add>, %10, %cst_5 [1] : vector<8x128xf32> to vector<8xf32>
    %12 = vector.shape_cast %11 : vector<8xf32> to vector<8x1xf32>
    %cst_6 = arith.constant 0.000000e+00 : f32
    %13 = vector.broadcast %cst_6 : f32 to vector<8x128xf32>
    %14 = arith.select %9, %6, %13 : vector<8x128xi1>, vector<8x128xf32>
    %cst_7 = arith.constant dense<0.000000e+00> : vector<8xf32>
    %15 = vector.multi_reduction <add>, %14, %cst_7 [1] : vector<8x128xf32> to vector<8xf32>
    %16 = vector.shape_cast %15 : vector<8xf32> to vector<8x1xf32>
    %17 = math.log %12 : vector<8x1xf32>
    %18 = arith.subf %17, %16 : vector<8x1xf32>
    %c0_i32 = arith.constant 0 : i32
    %19 = vector.broadcast %c0_i32 : i32 to vector<8x1xi32>
    %20 = arith.cmpi sge, %2, %19 : vector<8x1xi32>
    %c128_i32 = arith.constant 128 : i32
    %21 = vector.broadcast %c128_i32 : i32 to vector<8x1xi32>
    %22 = arith.cmpi slt, %2, %21 : vector<8x1xi32>
    %23 = arith.andi %20, %22 : vector<8x1xi1>
    %24 = arith.extui %23 : vector<8x1xi1> to vector<8x1xi32>
    %25 = arith.sitofp %24 : vector<8x1xi32> to vector<8x1xf32>
    %cst_8 = arith.constant 1.000000e+00 : f32
    %26 = arith.subf %cst_8, %0 : f32
    %cst_9 = arith.constant 1.000000e+00 : f32
    %27 = vector.broadcast %cst_9 : f32 to vector<8x1xf32>
    %28 = arith.subf %27, %25 : vector<8x1xf32>
    %29 = vector.broadcast %0 : f32 to vector<8x1xf32>
    %30 = arith.mulf %29, %28 : vector<8x1xf32>
    %31 = vector.broadcast %26 : f32 to vector<8x1xf32>
    %32 = arith.addf %31, %30 : vector<8x1xf32>
    %c8_i32 = arith.constant 8 : i32
    %33 = arith.muli %arg0, %c8_i32 : i32
    %34 = tpu.iota {dimensions = array<i32: 0>} : vector<8x1xi32>
    %35 = vector.broadcast %33 : i32 to vector<8x1xi32>
    %36 = arith.addi %35, %34 : vector<8x1xi32>
    %c8_i32_10 = arith.constant 8 : i32
    %37 = vector.broadcast %c8_i32_10 : i32 to vector<8x1xi32>
    %38 = arith.cmpi slt, %36, %37 : vector<8x1xi32>
    %39 = arith.mulf %18, %32 : vector<8x1xf32>
    %cst_11 = arith.constant 0.000000e+00 : f32
    %40 = vector.broadcast %cst_11 : f32 to vector<8x1xf32>
    %41 = arith.select %38, %39, %40 : vector<8x1xi1>, vector<8x1xf32>
    %42 = vector.shape_cast %41 : vector<8x1xf32> to vector<1x8x1xf32>
    %cst_12 = arith.constant dense<0.000000e+00> : vector<1xf32>
    %43 = vector.multi_reduction <add>, %42, %cst_12 [1, 2] : vector<1x8x1xf32> to vector<1xf32>
    %44 = vector.shape_cast %43 : vector<1xf32> to vector<1x1x1xf32>
    %45 = vector.extract %44[0, 0, 0] : f32 from vector<1x1x1xf32>
    %46 = tpu.iota {dimensions = array<i32: 0>} : vector<8x128xi32>
    %47 = tpu.iota {dimensions = array<i32: 1>} : vector<8x128xi32>
    %c0_i32_13 = arith.constant 0 : i32
    %48 = vector.broadcast %c0_i32_13 : i32 to vector<8x128xi32>
    %49 = arith.cmpi eq, %46, %48 : vector<8x128xi32>
    %c0_i32_14 = arith.constant 0 : i32
    %50 = vector.broadcast %c0_i32_14 : i32 to vector<8x128xi32>
    %51 = arith.cmpi eq, %47, %50 : vector<8x128xi32>
    %52 = arith.andi %49, %51 : vector<8x128xi1>
    %cst_15 = arith.constant 0.000000e+00 : f32
    %53 = vector.broadcast %45 : f32 to vector<8x128xf32>
    %54 = vector.broadcast %cst_15 : f32 to vector<8x128xf32>
    %55 = arith.select %52, %53, %54 : vector<8x128xi1>, vector<8x128xf32>
    %c0_16 = arith.constant 0 : index
    %c0_17 = arith.constant 0 : index
    %56 = vector.load %arg4[%c0_16, %c0_17] : memref<8x128xf32, #tpu.memory_space<vmem>>, vector<8x128xf32>
    tpu.vector_store %arg4[%c0_16, %c0_17], %55 {strides = array<i32>} : memref<8x128xf32, #tpu.memory_space<vmem>>, vector<8x128xf32>,
    return
  }
  func.func @transform_0(%arg0: i32) -> (i32, i32) {
    %c0_i32 = arith.constant 0 : i32
    %c0_i32_0 = arith.constant 0 : i32
    %c0_i32_1 = arith.constant 0 : i32
    return %c0_i32, %c0_i32_0 : i32, i32
  }
  func.func @transform_1(%arg0: i32) -> (i32, i32) {
    %c0_i32 = arith.constant 0 : i32
    %c0_i32_0 = arith.constant 0 : i32
    return %arg0, %c0_i32 : i32, i32
  }
  func.func @transform_2(%arg0: i32) -> (i32, i32) {
    %c0_i32 = arith.constant 0 : i32
    %c0_i32_0 = arith.constant 0 : i32
    return %arg0, %c0_i32 : i32, i32
  }
  func.func @transform_3(%arg0: i32) -> (i32, i32) {
    %c0_i32 = arith.constant 0 : i32
    %c0_i32_0 = arith.constant 0 : i32
    return %arg0, %c0_i32 : i32, i32
  }
}

</mosaic_0001>

<bundles_post_ra>
// kernel: tpu_custom_call.1
= control target key start
LH: loop header
LB: loop body
LE: loop exit
PB: predicated region body
PF: predicated region fallthrough
CT: control target
= control target key end

     0   :  { %s170_s0 = inlined_call_operand.<no memory space> [shape: f32[1,1], index: 0, kind: input, shape index: {}]   ;;  %s171_s1 = inlined_call_operand.vmem [shape: f32[8,128], index: 1, kind: input, shape index: {}]   ;;  %s172_s2 = inlined_call_operand.vmem [shape: s32[8,1], index: 2, kind: input, shape index: {}]   ;;  %s173_s3 = inlined_call_operand.hbm [shape: f32[8,128], index: 3, kind: output, shape index: {}]  }
   0x1   :  { %v17_v0 = vld [vmem:[%s171_s1] sm:$0xff] }
   0x2   :  { %9 = vsyncpa [#allocation4], 0  ;;  %19 = vmax.xlane.f32.xlu0 %v17_v0  ;;  %v123_v1 = vmov 0   ;;  %v18_v2 = vld [vmem:[%s172_s2] sm:$0xff]  ;;  %v22_v6 = vlaneseq  ;;  %v124_v12 = vmov 0.0   ;;  %s43_s16 = ssub.f32 1.0, %s170_s0  ;;  %v45_v15 = vstv %s170_s0 }
   0x3   :  { %94 = vset.pattern.permute.xlu0 %v123_v1  ;;  %vm38_vm1 = vcmp.ge.s32.totalorder %v18_v2, 0  ;;  %vm39_vm2 = vcmp.lt.s32.totalorder %v18_v2, 128  ;;  %vm57_vm4 = vcmask 7168   ;;  %s125_s0 = smov [#allocation3]  }
   0x4   :  { %v23_v7 = vand.u32 127, %v22_v6  ;;  %vm40_vm3 = vmand %vm38_vm1, %vm39_vm2  ;;  %v47_v17 = vstv %s43_s16  ;;  %v51_v32 = vshrl.u32 %v22_v6, 7  ;;  %s80_s19 = sshll.u32 %s125_s0, 4  ;;  %s81_s19 = int_to_ptr.vmem [resolvable:$true] %s80_s19 }
   0x5   :  { %v88_v13 = vsel %vm40_vm3, 1.0, %v124_v12  ;;  %s99_s21 = scalar_lea.vmem %s81_s19, 128  ;;  %p104_p1 = scmp.lt.s32.totalorder %s81_s19, %s81_s19 }
   0x6   :  { %v44_v14 = vsub.f32 1.0, %v88_v13  ;;  %vm68_vm5 = vcmp.eq.s32.totalorder %v51_v32, 0  ;;  %vm69_vm6 = vcmp.eq.s32.totalorder %v23_v7, 0  ;;  %p100_p0 = scmp.ne.s32.totalorder %s81_s19, %s99_s21  ;;  %p105_p2 = scmp.lt.s32.totalorder %s99_s21, %s99_s21 }
   0x7   :  { %vm70_vm7 = vmand %vm68_vm5, %vm69_vm6 }
   0x8   :  { %v46_v16 = vmul.f32 %v45_v15, %v44_v14  ;;  %p106_p3 = por %p105_p2, %p104_p1 }
   0xa   :  { %v48_v20 = vadd.f32 %v47_v17, %v46_v16  ;;  %p107_p4 = pnand %p106_p3, %p100_p0 }
  0x18   :  { %25 = vperm.xlu0 %94, %v18_v2  }
  0x8f   :  { %v20_v3 = vpop.xlane.xlu0 %19 }
  0x90   :  { %v21_v4 = vsub.f32 %v17_v0, %v20_v3 }
  0x92   :  { %v28_v5 = vmul.f32 1.442695, %v21_v4 }
  0x94   :  { %95 = vpow2.f32 %v28_v5 }
  0x97   :  { %v26_v8 = vpop.permute.xlu0 %25 }
  0x98   :  { %vm27_vm0 = vcmp.eq.s32.totalorder %v23_v7, %v26_v8 }
  0x99   :  { %v32_v10 = vsel %vm27_vm0, %v21_v4, 0.0 }
  0x9e   :  { %v96_v9 = vpop.eup %95 }
  0x9f   :  { %30 = vadd.xlane.f32.xlu1 %v96_v9 }
  0xa3   :  { %33 = vadd.xlane.f32.xlu1 %v32_v10 }
 0x12c   :  { %v31_v11 = vpop.xlane.xlu1 %30 }
 0x12d   :  { %97 = vlog2.f32 %v31_v11 }
 0x130   :  { %v34_v21 = vpop.xlane.xlu1 %33 }
 0x137   :  { %v98_v18 = vpop.eup %97 }
 0x138   :  { %v36_v19 = vmul.f32 0.6931472, %v98_v18 }
 0x13a   :  { %v37_v22 = vsub.f32 %v36_v19, %v34_v21 }
 0x13c   :  { %v55_v23 = vmul.f32 %v48_v20, %v37_v22 }
 0x13e   :  { %v58_v24 = vsel %vm57_vm4, %v55_v23, 0.0 }
 0x13f   :  { %59 = vadd.xlane.f32.xlu1 %v58_v24 }
 0x1cc   :  { %v60_v25 = vpop.xlane.xlu1 %59 }
 0x1cd   :  { %v61_v26 = vrot.slane %v60_v25, 4 }
 0x1cf   :  { %v62_v27 = vadd.f32 %v61_v26, %v60_v25 }
 0x1d1   :  { %v63_v28 = vrot.slane %v62_v27, 2 }
 0x1d3   :  { %v64_v29 = vadd.f32 %v63_v28, %v62_v27 }
 0x1d5   :  { %v65_v30 = vrot.slane %v64_v29, 1 }
 0x1d7   :  { %v66_v31 = vadd.f32 %v65_v30, %v64_v29 }
 0x1d9   :  { %89 = vpush %v66_v31 }
 0x20a   :  { %s90_s20 = spop %89 }
 0x20b   :  { %v71_v33 = vstv %s90_s20 }
 0x20c   :  { %v72_v34 = vsel %vm70_vm7, %v71_v33, 0.0 }
 0x20d   :  { %73 = vst [vmem:[#allocation3] sm:$0xff] %v72_v34 }
 0x20e   :  { %110 = shalt.err (!%p107_p4)
}
 0x20f   :  { %s111_s24 = scalar_lea.hbm %s173_s3, 128 }
 0x210   :  { %p112_p5 = scmp.ne.s32.totalorder %s173_s3, %s111_s24  ;;  %p115_p6 = scmp.lt.u32.totalorder %s111_s24, %s173_s3 }
 0x212   :  { %p117_p7 = pnand %p115_p6, %p112_p5 }
 0x214   :  { %120 = shalt.err (!%p117_p7)
}
 0x215   :  { %83 = dma.vmem_to_hbm [thread:$0]  %s81_s19, 128, %s173_s3, [#allocation4]  }
 0x216   :  { %121 = dma.done.wait [#allocation4], 128  }
 0x217   :  { %122 = vsyncadd [#allocation4], 4294967168 }
 0x218   :  { %87 = vsyncpa [#allocation4], 1 }

</bundles_post_ra>
